<compile_context>
chip_gen: v7x
topology: tpu7x:2x2x1
jax: 0.10.0
libtpu: 0.0.40
codegen_flags: <defaults>
</compile_context>

<pallas_src>
import functools

import jax
import jax.numpy as jnp
from jax.experimental import pallas as pl
from jax.experimental.pallas import tpu as pltpu

_LANE = 128


def _focal_tversky_partials_kernel(x_ref, t_ref, out_ref, *,
                                   tile_batch, tile_rows, total_rows,
                                   needs_mask):
    # x_ref / t_ref : (TB, 2, TR, 128) blocks in their native dtype.
    # out_ref       : (2, OUT_R, 128) f32, resident across the row-tile axis.
    #                 out_ref[0] accumulates tp partials, out_ref[1] tsum.
    r = pl.program_id(1)

    # --- init the per-batch-block accumulator on its first row tile ---------
    @pl.when(r == 0)
    def _init():
        out_ref[...] = jnp.zeros_like(out_ref)

    # --- per-tile elementwise work (cast to f32 in-register) ----------------
    x0 = x_ref[:, 0].astype(jnp.float32)
    x1 = x_ref[:, 1].astype(jnp.float32)
    # softmax over 2 classes == sigmoid of the logit difference (one EUP op).
    p0 = jax.nn.sigmoid(x0 - x1)

    t0 = t_ref[:, 0].astype(jnp.float32)
    t1 = t_ref[:, 1].astype(jnp.float32)

    tp_e = t1 + p0 * (t0 - t1)   # == p0*t0 + p1*t1  with p1 = 1 - p0
    ts_e = t0 + t1               # target mass; fn = tsum - tp in the epilogue

    fold = tile_batch * tile_rows

    def _part(e):
        # Lane-aligned partial reduction (VPU adds only in the common case);
        # the final cross-lane reduce happens once, in the JAX epilogue.
        if fold % 8 == 0:
            return jnp.sum(e.reshape(fold // 8, 8, _LANE), axis=0)
        return jnp.sum(e.reshape(fold, _LANE), axis=0, keepdims=True)

    def _acc(tp_v, ts_v):
        out_ref[0] += _part(tp_v)
        out_ref[1] += _part(ts_v)

    if needs_mask:
        # Only the last row tile can read past R; mask it there and keep the
        # steady state unmasked.
        last = pl.num_programs(1) - 1

        @pl.when(r != last)
        def _steady():
            _acc(tp_e, ts_e)

        @pl.when(r == last)
        def _tail():
            row = (jax.lax.broadcasted_iota(jnp.int32, (tile_rows, _LANE), 0)
                   + r * tile_rows)
            valid = row < total_rows
            _acc(jnp.where(valid, tp_e, 0.0), jnp.where(valid, ts_e, 0.0))
    else:
        _acc(tp_e, ts_e)


def focal_tversky_loss(logits, target_onehot, *, alpha_t=0.7, beta_t=0.3,
                       gamma_f=4.0 / 3.0, smooth=1e-6, tile_rows=None):
    """logits: (B, 2, H, W); target_onehot: (B, 2, H, W) (one-hot or soft)."""
    B, C, H, W = logits.shape
    assert C == 2, "FocalTverskyLoss here is fixed to num_classes=2"
    assert target_onehot.shape == logits.shape

    HW = H * W
    R = pl.cdiv(HW, _LANE)                    # rows of the (R, 128) pixel view

    # Free view when HW % 128 == 0 (common CellViT case); one-time pad otherwise.
    x = logits.reshape(B, C, HW)
    t = target_onehot.reshape(B, C, HW)
    if R * _LANE != HW:
        pad = R * _LANE - HW
        # Zero targets contribute nothing to tp / tsum, and fp / fn are derived
        # from the true element count below -> no in-kernel mask needed for pads.
        x = jnp.pad(x, ((0, 0), (0, 0), (0, pad)))
        t = jnp.pad(t, ((0, 0), (0, 0), (0, pad)))
    x = x.reshape(B, C, R, _LANE)
    t = t.reshape(B, C, R, _LANE)

    # Row tile: big blocks so per-grid-step overhead (~0.35 us) is amortized.
    # 2048 rows x 128 lanes x f32 = 1 MiB per class plane; two inputs
    # double-buffered stay well inside v5e's 16 MiB default scoped VMEM.
    if tile_rows is None:
        TR = min(R, 2048)
    else:
        TR = min(int(tile_rows), R)
    assert TR == R or TR % 8 == 0, "tile_rows must be a multiple of 8 (or >= R)"

    # Batch blocking for small images so each DMA block stays large.
    if R <= 512 and R % 8 == 0 and TR == R and B > 1:
        cap = max(1, 2048 // R)
        TB = max(d for d in range(1, min(B, cap) + 1) if B % d == 0)
    else:
        TB = 1

    NB = B // TB
    NT = pl.cdiv(R, TR)
    needs_mask = (NT * TR != R)                # only a partial last row tile
    OUT_R = 8 if (TB * TR) % 8 == 0 else 1

    in_block_bytes = TB * C * TR * _LANE * (x.dtype.itemsize + t.dtype.itemsize)
    vmem_limit = int(min(64 * 1024 * 1024,
                         max(16 * 1024 * 1024, 2 * in_block_bytes + (4 << 20))))

    kernel = functools.partial(
        _focal_tversky_partials_kernel,
        tile_batch=int(TB), tile_rows=int(TR), total_rows=int(R),
        needs_mask=bool(needs_mask),
    )

    partials = pl.pallas_call(
        kernel,
        out_shape=jax.ShapeDtypeStruct((NB, 2, OUT_R, _LANE), jnp.float32),
        grid_spec=pltpu.PrefetchScalarGridSpec(
            num_scalar_prefetch=0,
            grid=(NB, NT),
            in_specs=[
                pl.BlockSpec((TB, C, TR, _LANE), lambda bb, r: (bb, 0, r, 0)),
                pl.BlockSpec((TB, C, TR, _LANE), lambda bb, r: (bb, 0, r, 0)),
            ],
            out_specs=pl.BlockSpec((None, 2, OUT_R, _LANE),
                                   lambda bb, r: (bb, 0, 0, 0)),
        ),
        compiler_params=pltpu.CompilerParams(
            dimension_semantics=("parallel", "arbitrary"),
            vmem_limit_bytes=vmem_limit),
    )(x, t)

    # Tiny epilogue in plain JAX (cross-lane reduce + Tversky + focal power).
    tp = jnp.sum(partials[:, 0])
    tsum = jnp.sum(partials[:, 1])
    count = jnp.float32(B * HW)          # sum of softmax probs over valid pixels
    fp = count - tp                      # sum((1 - t) * p) = sum(p) - tp
    fn = tsum - tp                       # sum(t * (1 - p)) = sum(t) - tp
    tversky = (tp + smooth) / (tp + alpha_t * fn + beta_t * fp + smooth)
    # Clamp guards against tiny negative (1 - tversky) from f32 rounding.
    return jnp.power(jnp.maximum(1.0 - tversky, 0.0), jnp.float32(gamma_f))


def _reference_loss(logits, target_onehot, alpha_t=0.7, beta_t=0.3,
                    gamma_f=4.0 / 3.0, smooth=1e-6):
    # Pure-JAX mirror of the PyTorch forward (NCHW -> NHWC -> flatten).
    inp = jnp.transpose(logits, (0, 2, 3, 1)).astype(jnp.float32)
    tgt = jnp.transpose(target_onehot, (0, 2, 3, 1)).astype(jnp.float32)
    p = jax.nn.softmax(inp, axis=-1).reshape(-1)
    tgt = tgt.reshape(-1)
    tp = jnp.sum(p * tgt)
    fp = jnp.sum((1.0 - tgt) * p)
    fn = jnp.sum(tgt * (1.0 - p))
    tversky = (tp + smooth) / (tp + alpha_t * fn + beta_t * fp + smooth)
    return (1.0 - tversky) ** gamma_f


if __name__ == "__main__":
    key = jax.random.PRNGKey(0)

    def make_case(k, B, H, W, dtype):
        k1, k2 = jax.random.split(k)
        logits = jax.random.normal(k1, (B, 2, H, W), dtype=jnp.float32).astype(dtype)
        labels = jax.random.randint(k2, (B, H, W), 0, 2)
        onehot = jnp.moveaxis(jax.nn.one_hot(labels, 2, dtype=dtype), -1, 1)
        return logits, onehot

    cases = [
        # (B, H,  W,  dtype,        tile_rows)
        (2, 16, 16, jnp.float32, None),   # HW % 128 == 0, tiny full-dim tile
        (1, 12, 12, jnp.float32, None),   # HW % 128 != 0 -> one-time zero pad
        (2, 40, 40, jnp.bfloat16, 8),     # multi-tile grid, partial tail tile, bf16
        (4, 32, 32, jnp.float32, None),   # batch-blocked path (TB > 1)
    ]
    for i, (B, H, W, dtype, tr) in enumerate(cases):
        key, sub = jax.random.split(key)
        logits, target = make_case(sub, B, H, W, dtype)
        got = jax.block_until_ready(focal_tversky_loss(logits, target, tile_rows=tr))
        want = _reference_loss(logits, target)
        assert jnp.allclose(got, want, rtol=1e-4, atol=1e-4), (i, got, want)

    print("KERNEL_OK")
</pallas_src>

<mosaic_0001>
module attributes {stable_mosaic.version = 11 : i64} {
  func.func @_focal_tversky_partials_kernel(%arg0: i32, %arg1: i32, %arg2: memref<1x2x2x128xf32, #tpu.memory_space<vmem>>, %arg3: memref<1x2x2x128xf32, #tpu.memory_space<vmem>>, %arg4: memref<1x2x1x128xf32, #tpu.memory_space<vmem>>) attributes {dimension_semantics = [#tpu.dimension_semantics<parallel>, #tpu.dimension_semantics<arbitrary>], iteration_bounds = array<i64: 2, 1>, scalar_prefetch = 0 : i64, scratch_operands = 0 : i64, tpu.core_type = #tpu.core_type<tc>, window_params = [{transform_indices = @transform_0, window_bounds = array<i64: 1, 2, 2, 128>}, {transform_indices = @transform_1, window_bounds = array<i64: 1, 2, 2, 128>}, {transform_indices = @transform_2, window_bounds = array<i64: 1, 2, 1, 128>}]} {
    %c0_i32 = arith.constant 0 : i32
    %0 = arith.cmpi eq, %arg1, %c0_i32 : i32
    %1 = arith.extui %0 : i1 to i32
    %c0_i32_0 = arith.constant 0 : i32
    %2 = arith.cmpi ne, %1, %c0_i32_0 : i32
    scf.if %2 {
      %cst_33 = arith.constant 0.000000e+00 : f32
      %39 = vector.broadcast %cst_33 : f32 to vector<2x1x128xf32>
      %c0_34 = arith.constant 0 : index
      %c0_35 = arith.constant 0 : index
      %c0_36 = arith.constant 0 : index
      %c0_37 = arith.constant 0 : index
      %40 = vector.load %arg4[%c0_34, %c0_35, %c0_36, %c0_37] : memref<1x2x1x128xf32, #tpu.memory_space<vmem>>, vector<1x2x1x128xf32>
      %41 = vector.shape_cast %40 : vector<1x2x1x128xf32> to vector<2x1x128xf32>
      %42 = vector.shape_cast %39 : vector<2x1x128xf32> to vector<1x2x1x128xf32>
      tpu.vector_store %arg4[%c0_34, %c0_35, %c0_36, %c0_37], %42 {strides = array<i32>} : memref<1x2x1x128xf32, #tpu.memory_space<vmem>>, vector<1x2x1x128xf32>,
    } else {
    }
    %c0 = arith.constant 0 : index
    %c0_1 = arith.constant 0 : index
    %c0_2 = arith.constant 0 : index
    %c0_3 = arith.constant 0 : index
    %3 = vector.load %arg2[%c0, %c0_1, %c0_2, %c0_3] : memref<1x2x2x128xf32, #tpu.memory_space<vmem>>, vector<1x1x2x128xf32>
    %4 = vector.shape_cast %3 : vector<1x1x2x128xf32> to vector<1x2x128xf32>
    %c0_4 = arith.constant 0 : index
    %c1 = arith.constant 1 : index
    %c0_5 = arith.constant 0 : index
    %c0_6 = arith.constant 0 : index
    %5 = vector.load %arg2[%c0_4, %c1, %c0_5, %c0_6] : memref<1x2x2x128xf32, #tpu.memory_space<vmem>>, vector<1x1x2x128xf32>
    %6 = vector.shape_cast %5 : vector<1x1x2x128xf32> to vector<1x2x128xf32>
    %7 = arith.subf %4, %6 : vector<1x2x128xf32>
    %8 = arith.negf %7 : vector<1x2x128xf32>
    %9 = math.exp %8 : vector<1x2x128xf32>
    %cst = arith.constant 1.000000e+00 : f32
    %10 = vector.broadcast %cst : f32 to vector<1x2x128xf32>
    %11 = arith.addf %10, %9 : vector<1x2x128xf32>
    %12 = arith.divf %10, %11 : vector<1x2x128xf32>
    %c0_7 = arith.constant 0 : index
    %c0_8 = arith.constant 0 : index
    %c0_9 = arith.constant 0 : index
    %c0_10 = arith.constant 0 : index
    %13 = vector.load %arg3[%c0_7, %c0_8, %c0_9, %c0_10] : memref<1x2x2x128xf32, #tpu.memory_space<vmem>>, vector<1x1x2x128xf32>
    %14 = vector.shape_cast %13 : vector<1x1x2x128xf32> to vector<1x2x128xf32>
    %c0_11 = arith.constant 0 : index
    %c1_12 = arith.constant 1 : index
    %c0_13 = arith.constant 0 : index
    %c0_14 = arith.constant 0 : index
    %15 = vector.load %arg3[%c0_11, %c1_12, %c0_13, %c0_14] : memref<1x2x2x128xf32, #tpu.memory_space<vmem>>, vector<1x1x2x128xf32>
    %16 = vector.shape_cast %15 : vector<1x1x2x128xf32> to vector<1x2x128xf32>
    %17 = arith.subf %14, %16 : vector<1x2x128xf32>
    %18 = arith.mulf %12, %17 : vector<1x2x128xf32>
    %19 = arith.addf %16, %18 : vector<1x2x128xf32>
    %20 = arith.addf %14, %16 : vector<1x2x128xf32>
    %c0_15 = arith.constant 0 : index
    %c0_16 = arith.constant 0 : index
    %c0_17 = arith.constant 0 : index
    %c0_18 = arith.constant 0 : index
    %21 = vector.load %arg4[%c0_15, %c0_16, %c0_17, %c0_18] : memref<1x2x1x128xf32, #tpu.memory_space<vmem>>, vector<1x1x1x128xf32>
    %22 = vector.shape_cast %21 : vector<1x1x1x128xf32> to vector<1x128xf32>
    %23 = vector.shape_cast %19 : vector<1x2x128xf32> to vector<2x128xf32>
    %cst_19 = arith.constant dense<0.000000e+00> : vector<128xf32>
    %24 = vector.multi_reduction <add>, %23, %cst_19 [0] : vector<2x128xf32> to vector<128xf32>
    %25 = vector.shape_cast %24 : vector<128xf32> to vector<1x128xf32>
    %26 = arith.addf %22, %25 : vector<1x128xf32>
    %c0_20 = arith.constant 0 : index
    %c0_21 = arith.constant 0 : index
    %c0_22 = arith.constant 0 : index
    %c0_23 = arith.constant 0 : index
    %27 = vector.load %arg4[%c0_20, %c0_21, %c0_22, %c0_23] : memref<1x2x1x128xf32, #tpu.memory_space<vmem>>, vector<1x1x1x128xf32>
    %28 = vector.shape_cast %27 : vector<1x1x1x128xf32> to vector<1x128xf32>
    %29 = vector.shape_cast %26 : vector<1x128xf32> to vector<1x1x1x128xf32>
    tpu.vector_store %arg4[%c0_20, %c0_21, %c0_22, %c0_23], %29 {strides = array<i32>} : memref<1x2x1x128xf32, #tpu.memory_space<vmem>>, vector<1x1x1x128xf32>,
    %c0_24 = arith.constant 0 : index
    %c1_25 = arith.constant 1 : index
    %c0_26 = arith.constant 0 : index
    %c0_27 = arith.constant 0 : index
    %30 = vector.load %arg4[%c0_24, %c1_25, %c0_26, %c0_27] : memref<1x2x1x128xf32, #tpu.memory_space<vmem>>, vector<1x1x1x128xf32>
    %31 = vector.shape_cast %30 : vector<1x1x1x128xf32> to vector<1x128xf32>
    %32 = vector.shape_cast %20 : vector<1x2x128xf32> to vector<2x128xf32>
    %cst_28 = arith.constant dense<0.000000e+00> : vector<128xf32>
    %33 = vector.multi_reduction <add>, %32, %cst_28 [0] : vector<2x128xf32> to vector<128xf32>
    %34 = vector.shape_cast %33 : vector<128xf32> to vector<1x128xf32>
    %35 = arith.addf %31, %34 : vector<1x128xf32>
    %c0_29 = arith.constant 0 : index
    %c1_30 = arith.constant 1 : index
    %c0_31 = arith.constant 0 : index
    %c0_32 = arith.constant 0 : index
    %36 = vector.load %arg4[%c0_29, %c1_30, %c0_31, %c0_32] : memref<1x2x1x128xf32, #tpu.memory_space<vmem>>, vector<1x1x1x128xf32>
    %37 = vector.shape_cast %36 : vector<1x1x1x128xf32> to vector<1x128xf32>
    %38 = vector.shape_cast %35 : vector<1x128xf32> to vector<1x1x1x128xf32>
    tpu.vector_store %arg4[%c0_29, %c1_30, %c0_31, %c0_32], %38 {strides = array<i32>} : memref<1x2x1x128xf32, #tpu.memory_space<vmem>>, vector<1x1x1x128xf32>,
    return
  }
  func.func @transform_0(%arg0: i32, %arg1: i32) -> (i32, i32, i32, i32) {
    %c0_i32 = arith.constant 0 : i32
    %c0_i32_0 = arith.constant 0 : i32
    %c0_i32_1 = arith.constant 0 : i32
    return %arg0, %c0_i32, %arg1, %c0_i32_0 : i32, i32, i32, i32
  }
  func.func @transform_1(%arg0: i32, %arg1: i32) -> (i32, i32, i32, i32) {
    %c0_i32 = arith.constant 0 : i32
    %c0_i32_0 = arith.constant 0 : i32
    %c0_i32_1 = arith.constant 0 : i32
    return %arg0, %c0_i32, %arg1, %c0_i32_0 : i32, i32, i32, i32
  }
  func.func @transform_2(%arg0: i32, %arg1: i32) -> (i32, i32, i32, i32) {
    %c0_i32 = arith.constant 0 : i32
    %c0_i32_0 = arith.constant 0 : i32
    %c0_i32_1 = arith.constant 0 : i32
    %c0_i32_2 = arith.constant 0 : i32
    return %arg0, %c0_i32, %c0_i32_0, %c0_i32_1 : i32, i32, i32, i32
  }
}

</mosaic_0001>

<bundles_post_ra>
// kernel: tpu_custom_call.1
= control target key start
LH: loop header
LB: loop body
LE: loop exit
PB: predicated region body
PF: predicated region fallthrough
CT: control target
= control target key end

     0   :  { %7 = vsyncpa [#allocation3], 0  ;;  %s909_s0 = inlined_call_operand.hbm [shape: f32[2,2,2,128], index: 0, kind: input, shape index: {}]   ;;  %s910_s1 = inlined_call_operand.hbm [shape: f32[2,2,2,128], index: 1, kind: input, shape index: {}]   ;;  %s911_s2 = inlined_call_operand.hbm [shape: f32[2,2,1,128], index: 2, kind: output, shape index: {}]  }
   0x1   :  { %9 = vsyncpa [#allocation3 + $0x1], 0 }
   0x2   :  { %10 = vsyncpa [#allocation6], 0 }
   0x3   :  { %12 = vsyncpa [#allocation6 + $0x1], 0 }
   0x4   :  { %13 = vsyncpa [#allocation4], 0 }
   0x5   :  { %15 = vsyncpa [#allocation4 + $0x1], 0  ;;  %s661_s9 = smov 0   ;;  %s663_s10 = smov 0  }
   0x6   :  { %s665_s11 = smov 0   ;;  %s667_s12 = smov 0  }
   0x7   :  { %s669_s13 = smov 0   ;;  %s671_s14 = smov 0  }
   0x8 LB: > { %s387_s15 = sadd.s32 4294967295, %s636_s14   ;;  %s388_s16 = sadd.s32 4294967294, %s636_s14   ;;  %s636_s14 = sphi %s671_s14, %s21_s14   ;;  %s632_s13 = sphi %s669_s13, %s929_s13   ;;  %s628_s12 = sphi %s667_s12, %s928_s12   ;;  %s624_s11 = sphi %s665_s11, %s927_s11   ;;  %s620_s10 = sphi %s663_s10, %s926_s10   ;;  %s616_s9 = sphi %s661_s9, %s925_s9  }
   0x9   : > { %s33_s17 = sadd.s32 1, %s632_s13  ;;  %s42_s18 = sadd.s32 1, %s624_s11 }
   0xa   : > { %p35_p0 = scmp.ge.s32.totalorder %s33_s17, 2  ;;  %p49_p1 = scmp.ne.s32.totalorder %s624_s11, %s620_s10 }
   0xb   : > { %p50_p2 = scmp.eq.s32.totalorder %s636_s14, 0  ;;  %p55_p3 = scmp.ne.s32.totalorder %s620_s10, %s616_s9 }
   0xc   : > { %s931_s17 = smov (%p35_p0, %s33_s17), 0  ;;  %p56_p5 = scmp.eq.s32.totalorder %s387_s15, 0 }
   0xd   : > { %p702_p4 = por %p50_p2, %p49_p1  ;;  %s37_s20 = ssub.s32 %s632_s13, %s931_s17 }
   0xe   : > { %p107_p6 = scmp.eq.s32.totalorder %s387_s15, 1  ;;  %p40_p7 = scmp.eq.s32.totalorder %s37_s20, 0 }
   0xf   : > { %p708_p8 = por %p56_p5, %p55_p3  ;;  %p113_p10 = scmp.eq.s32.totalorder %s388_s16, 1 }
  0x10   : > { %p712_p9 = por %p107_p6, %p49_p1  ;;  %p431_p13 = scmp.lt.s32.totalorder %s636_s14, 2 }
  0x11   : > { %s915_s21 = scalar_select %p708_p8, 1, 0 }
  0x12   : > { %s916_s22 = scalar_select %p712_p9, 1, 0 }
  0x13   : > { %s717_s23 = scalar_select %p40_p7, %s624_s11, %s42_s18  }
  0x14   : > { %p719_p11 = por %p113_p10, %p55_p3  ;;  %s726_s25 = sand.u32 1, %s624_s11  }
  0x15   : > { %s391_s26 = sshll.u32 %s726_s25, 2  ;;  %s411_s27 = sshll.u32 %s632_s13, 6 }
  0x16   : > { %s917_s24 = scalar_select %p719_p11, 1, 0 }
  0x17   : > { %s735_s30 = scalar_lea.hbm %s909_s0, %s411_s27  ;;  %s137_s3 = scalar_lea.vmem [#allocation2], %s391_s26 }
  0x18   : > { %s145_s4 = sshll.u32 %s137_s3, 4  ;;  %p743_p0 = pnand %p431_p13, %p702_p4  ;;  %s739_s4 = int_to_ptr.vmem [resolvable:$true] %s145_s4 }
  0x19   : > { %s134_s6 = scalar_lea.sflag [#allocation3], %s726_s25  ;;  %s490_s7 = scalar_lea.hbm %s735_s30, 64 }
  0x1a   : > { %p491_p2 = scmp.ne.s32.totalorder %s735_s30, %s490_s7  ;;  %p492_p3 = pneg %p743_p0 }
  0x1b   : > { %s495_s16 = scalar_lea.hbm %s909_s0, 128  ;;  %p496_p4 = scmp.lt.u32.totalorder %s735_s30, %s909_s0 }
  0x1c   : > { %p493_p5 = pnand %p492_p3, %p491_p2  ;;  %p497_p7 = scmp.lt.u32.totalorder %s495_s16, %s490_s7 }
  0x1d   : > { %p499_p13 = scmp.lt.u32.totalorder %s490_s7, %s735_s30 }
  0x1e   : > { %p494_p6 = pneg %p493_p5  ;;  %p498_p10 = por %p497_p7, %p496_p4 }
  0x20   : > { %p500_p12 = por %p499_p13, %p498_p10 }
  0x22   : > { %p501_p1 = pnand %p500_p12, %p494_p6 }
  0x24   : > { %504 = shalt.err (!%p501_p1)
}
  0x25   : > { %s505_s20 = scalar_lea.vmem %s739_s4, 64  ;;  %s638_s28 = smov [#allocation2]  }
  0x26   : > { %p506_p2 = scmp.ne.s32.totalorder %s739_s4, %s505_s20  ;;  %s510_s29 = sshll.u32 %s638_s28, 4  ;;  %s511_s29 = int_to_ptr.vmem [resolvable:$false] %s510_s29 }
  0x27   : > { %s512_s3 = scalar_lea.vmem %s511_s29, 128  ;;  %p513_p9 = scmp.lt.s32.totalorder %s739_s4, %s511_s29 }
  0x28   : > { %p508_p5 = pnand %p506_p2, %p492_p3  ;;  %p514_p4 = scmp.lt.s32.totalorder %s512_s3, %s505_s20 }
  0x2a   : > { %p509_p11 = pneg %p508_p5  ;;  %p515_p7 = por %p514_p4, %p513_p9 }
  0x2c   : > { %p516_p10 = pnand %p515_p7, %p509_p11 }
  0x2e   : > { %519 = shalt.err (!%p516_p10)
}
  0x2f   : > { %s639_s7 = smov 32   ;;  %s640_s8 = smov 2  }
  0x30   : > { %423 = dma.hbm_to_vmem [thread:$0]  (!%p743_p0), %s735_s30, 64, %s739_s4, %s134_s6, %s639_s7, %s639_s7, %s640_s8  }
  0x31   : > { %p175_p9 = scmp.lt.s32.totalorder %s636_s14, 3  ;;  %s785_s18 = scalar_lea.hbm %s910_s1, %s411_s27 }
  0x32   : > { %p919_p11 = scmp.ge.s32.totalorder %s636_s14, 1  ;;  %s159_s20 = scalar_lea.vmem [#allocation5], %s391_s26 }
  0x33   : > { %s167_s28 = sshll.u32 %s159_s20, 4  ;;  %s156_s30 = scalar_lea.sflag [#allocation6], %s726_s25  ;;  %s795_s28 = int_to_ptr.vmem [resolvable:$true] %s167_s28 }
  0x34   : > { %p789_p12 = pnand %p919_p11, %p175_p9  ;;  %s520_s4 = scalar_lea.hbm %s785_s18, 64 }
  0x35   : > { %p521_p1 = scmp.ne.s32.totalorder %s785_s18, %s520_s4  ;;  %s525_s29 = scalar_lea.hbm %s910_s1, 128 }
  0x36   : > { %p526_p2 = scmp.lt.u32.totalorder %s785_s18, %s910_s1  ;;  %p527_p5 = scmp.lt.u32.totalorder %s525_s29, %s520_s4 }
  0x37   : > { %p523_p6 = pnand %p521_p1, %p492_p3  ;;  %p529_p7 = scmp.lt.u32.totalorder %s520_s4, %s785_s18 }
  0x38   : > { %p528_p4 = por %p527_p5, %p526_p2 }
  0x39   : > { %p524_p13 = pneg %p523_p6 }
  0x3a   : > { %p530_p10 = por %p529_p7, %p528_p4 }
  0x3c   : > { %p531_p9 = pnand %p530_p10, %p524_p13 }
  0x3e   : > { %534 = shalt.err (!%p531_p9)
}
  0x3f   : > { %s535_s26 = scalar_lea.vmem %s795_s28, 64  ;;  %s641_s16 = smov [#allocation5]  }
  0x40   : > { %p536_p11 = scmp.ne.s32.totalorder %s795_s28, %s535_s26  ;;  %s540_s20 = sshll.u32 %s641_s16, 4  ;;  %s541_s20 = int_to_ptr.vmem [resolvable:$false] %s540_s20 }
  0x41   : > { %s542_s27 = scalar_lea.vmem %s541_s20, 128  ;;  %p543_p8 = scmp.lt.s32.totalorder %s795_s28, %s541_s20 }
  0x42   : > { %p538_p1 = pnand %p536_p11, %p492_p3  ;;  %p544_p2 = scmp.lt.s32.totalorder %s542_s27, %s535_s26 }
  0x44   : > { %p539_p6 = pneg %p538_p1  ;;  %p545_p5 = por %p544_p2, %p543_p8 }
  0x46   : > { %p546_p4 = pnand %p545_p5, %p539_p6 }
  0x48   : > { %549 = shalt.err (!%p546_p4)
}
  0x49   : > { %426 = dma.hbm_to_vmem [thread:$0]  (!%p743_p0), %s785_s18, 64, %s795_s28, %s156_s30, %s639_s7, %s639_s7, %s640_s8  }
  0x4a   : > { %179 = sbr.rel (%p789_p12) target bundleno = 148 (0x94), region = 28  ;;  %s829_s4 = sand.u32 (!%p789_p12), 1, %s620_s10  }
  0x4b   : > { %s398_s6 = sshll.u32 (!%p789_p12), %s829_s4, 2  ;;  %s182_s29 = scalar_lea.sflag (!%p789_p12), [#allocation3], %s829_s4 }
  0x4c   : > { %s185_s5 = scalar_lea.vmem (!%p789_p12), [#allocation2], %s398_s6  ;;  %p921_p8 = scmp.ne.s32.totalorder (!%p789_p12), %s915_s21, 0 }
  0x51   : > { %603 = dma.done.wait (%p921_p8), %s182_s29, 64  }
  0x52   : > { %605 = vsyncadd (%p921_p8), %s182_s29, 4294967232  ;;  %s191_s25 = scalar_lea.sflag [#allocation6], %s829_s4  ;;  %s194_s7 = scalar_lea.vmem [#allocation5], %s398_s6 }
  0x53   : > { %607 = dma.done.wait (%p921_p8), %s191_s25, 64  }
  0x54   : > { %609 = vsyncadd (%p921_p8), %s191_s25, 4294967232  ;;  %s400_s8 = sshll.u32 %s829_s4, 1  ;;  %v642_v0 = vmov 0.0   ;;  %v226_v1 = vld [vmem:[%s185_s5] sm:$0x3]  ;;  %vm244_vm0 = vcmask 1041408  }
  0x55   : > { %s843_s18 = scalar_lea.vmem [#allocation7], %s400_s8  ;;  %v401_v2 = vld [vmem:[%s185_s5 + $0x2] sm:$0x3]  ;;  %v236_v4 = vld [vmem:[%s194_s7] sm:$0x3]  ;;  %s413_s21 = sshll.u32 %s628_s12, 5 }
  0x56   : > { %224 = vst [vmem:[%s843_s18] sm:$0x1] %v642_v0  ;;  %225 = vst [vmem:[%s843_s18 + $0x1] sm:$0x1] %v642_v0  ;;  %v229_v3 = vsub.f32 %v226_v1, %v401_v2  ;;  %v403_v5 = vld [vmem:[%s194_s7 + $0x2] sm:$0x3]  ;;  %s279_s19 = sshll.u32 %s843_s18, 4  ;;  %s857_s3 = scalar_lea.hbm %s911_s2, %s413_s21  ;;  %s859_s19 = int_to_ptr.vmem [resolvable:$true] %s279_s19 }
  0x57   : > { %v242_v6 = vadd.f32 %v403_v5, %v236_v4  ;;  %v239_v19 = vsub.f32 %v236_v4, %v403_v5  ;;  %s266_s15 = scalar_lea.sflag [#allocation4], %s829_s4  ;;  %s550_s26 = scalar_lea.vmem %s859_s19, 32 }
  0x58   : > { %v402_v7 = vmul.f32 -1.442695, %v229_v3  ;;  %p551_p0 = scmp.ne.s32.totalorder %s859_s19, %s550_s26  ;;  %p922_p3 = scmp.ne.s32.totalorder %s916_s22, 0 }
  0x59   : > { %v256_v8 = vsel %vm244_vm0, %v242_v6, 0.0  ;;  %s643_s12 = smov [#allocation7]  }
  0x5a   : > { %486 = vpow2.f32 %v402_v7  ;;  %v257_v9 = vrot.slane %v256_v8, 4  ;;  %p552_p12 = pnand %p551_p0, %p922_p3  ;;  %s554_s16 = sshll.u32 %s643_s12, 4  ;;  %s555_s16 = int_to_ptr.vmem [resolvable:$false] %s554_s16 }
  0x5b   : > { %s556_s20 = scalar_lea.vmem %s555_s16, 64  ;;  %p557_p7 = scmp.lt.s32.totalorder %s859_s19, %s555_s16 }
  0x5c   : > { %v258_v10 = vadd.f32 %v257_v9, %v256_v8  ;;  %p553_p13 = pneg %p552_p12  ;;  %p558_p10 = scmp.lt.s32.totalorder %s556_s20, %s550_s26 }
  0x5d   : > { %v404_v14 = vld [vmem:[%s843_s18 + $0x1] sm:$0x1]  ;;  %v243_v29 = vld [vmem:[%s843_s18] sm:$0x1] }
  0x5e   : > { %v259_v11 = vrot.slane %v258_v10, 2  ;;  %p559_p9 = por %p558_p10, %p557_p7 }
  0x60   : > { %v260_v12 = vadd.f32 %v259_v11, %v258_v10  ;;  %p560_p11 = pnand %p559_p9, %p553_p13 }
  0x62   : > { %v261_v13 = vrot.slane %v260_v12, 1 }
  0x64   : > { %v487_v15 = vpop.eup %486  ;;  %v262_v16 = vadd.f32 %v261_v13, %v260_v12 }
  0x65   : > { %v233_v17 = vadd.f32 1.0, %v487_v15 }
  0x66   : > { %v263_v18 = vadd.f32 %v404_v14, %v262_v16 }
  0x67   : > { %488 = vrcp.f32 %v233_v17 }
  0x68   : > { %405 = vst [vmem:[%s843_s18 + $0x1] sm:$0x1] %v263_v18 }
  0x71   : > { %v489_v20 = vpop.eup %488 }
  0x72   : > { %v240_v21 = vmul.f32 %v489_v20, %v239_v19 }
  0x74   : > { %v241_v22 = vadd.f32 %v403_v5, %v240_v21 }
  0x76   : > { %v245_v23 = vsel %vm244_vm0, %v241_v22, 0.0 }
  0x77   : > { %v246_v24 = vrot.slane %v245_v23, 4 }
  0x79   : > { %v247_v25 = vadd.f32 %v246_v24, %v245_v23 }
  0x7b   : > { %v248_v26 = vrot.slane %v247_v25, 2 }
  0x7d   : > { %v249_v27 = vadd.f32 %v248_v26, %v247_v25 }
  0x7f   : > { %v250_v28 = vrot.slane %v249_v27, 1 }
  0x81   : > { %v251_v30 = vadd.f32 %v250_v28, %v249_v27 }
  0x83   : > { %v252_v31 = vadd.f32 %v251_v30, %v243_v29 }
  0x85   : > { %253 = vst [vmem:[%s843_s18] sm:$0x1] %v252_v31 }
  0x86   : > { %563 = shalt.err (!%p560_p11)
}
  0x87   : > { %s564_s27 = scalar_lea.hbm %s857_s3, 32  ;;  %s568_s5 = scalar_lea.hbm %s911_s2, 64 }
  0x88   : > { %p565_p1 = scmp.ne.s32.totalorder %s857_s3, %s564_s27  ;;  %p569_p5 = scmp.lt.u32.totalorder %s857_s3, %s911_s2 }
  0x89   : > { %p570_p4 = scmp.lt.u32.totalorder %s568_s5, %s564_s27  ;;  %p572_p0 = scmp.lt.u32.totalorder %s564_s27, %s857_s3 }
  0x8a   : > { %p566_p6 = pnand %p565_p1, %p922_p3 }
  0x8b   : > { %p571_p8 = por %p570_p4, %p569_p5 }
  0x8c   : > { %p567_p2 = pneg %p566_p6 }
  0x8d   : > { %p573_p12 = por %p572_p0, %p571_p8 }
  0x8f   : > { %p574_p13 = pnand %p573_p12, %p567_p2 }
  0x91   : > { %577 = shalt.err (!%p574_p13)
}
  0x92   : > { %s644_s8 = smov 16   ;;  %s645_s18 = smov 1  }
  0x93   : > { %418 = dma.vmem_to_hbm [thread:$0]  (%p922_p3), %s859_s19, 32, %s857_s3, %s266_s15, %s644_s8, %s644_s8, %s645_s18  }
  0x94 PF: > { %s294_s21 = sand.u32 1, %s616_s9   ;;  %p923_p7 = scmp.ne.s32.totalorder %s917_s24, 0 }
  0x95   : > { %p924_p10 = scmp.ge.s32.totalorder %s636_s14, 2  ;;  %s295_s28 = scalar_lea.sflag [#allocation4], %s294_s21 }
  0x97   : > { %p428_p9 = pnand %p924_p10, %p923_p7 }
  0x99   : > { %611 = dma.done.wait (!%p428_p9), %s295_s28, 32  }
  0x9a   : > { %613 = vsyncadd (!%p428_p9), %s295_s28, 4294967264  ;;  %s21_s14 = sadd.s32 1, %s636_s14   ;;  %s925_s9 = smov %s620_s10 }
  0x9b   : > { %p18_p11 = scmp.ge.s32.totalorder %s21_s14, 4   ;;  %s926_s10 = smov %s624_s11 }
  0x9c   : > { %s927_s11 = smov %s717_s23  ;;  %s928_s12 = smov %s632_s13 }
  0x9d   : > { %s929_s13 = smov %s931_s17  ;;  %20 = sbr.rel (!%p18_p11) target bundleno = 8 (0x8), region = 93 }
  0xa4   :  { %300 = vsyncpa [#allocation3], 1 }
  0xa5   :  { %302 = vsyncpa [#allocation3 + $0x1], 1 }
  0xa6   :  { %303 = vsyncpa [#allocation6], 1 }
  0xa7   :  { %305 = vsyncpa [#allocation6 + $0x1], 1 }
  0xa8   :  { %306 = vsyncpa [#allocation4], 1 }
  0xa9   :  { %308 = vsyncpa [#allocation4 + $0x1], 1 }

</bundles_post_ra>
